<compile_context>
chip_gen: v7x
topology: tpu7x:2x2x1
jax: 0.10.0
libtpu: 0.0.40
codegen_flags: <defaults>
</compile_context>

<pallas_src>
import jax
import jax.numpy as jnp
from jax.experimental import pallas as pl
from jax.experimental.pallas import tpu as pltpu


def _round_up(x, m):
    return ((x + m - 1) // m) * m


def _make_cascade_kernel(n_layers, n_levels):
    """Kernel over one packed row tile of the whole fusion cascade.

    Ref order: w1s (L,lane,lane) bf16, b1s (L,1,lane) f32,
               w2s (L,lane,lane) bf16, b2s (L,1,lane) f32,
               x_0 ... x_L (tr,lane) f32, out (tr,lane) f32.
    """
    assert n_levels == n_layers + 1

    def kernel(*refs):
        w1_ref, b1_ref, w2_ref, b2_ref = refs[0], refs[1], refs[2], refs[3]
        x_refs = refs[4:4 + n_levels]
        out_ref = refs[4 + n_levels]

        cur = x_refs[n_layers][...]                         # deepest level, f32
        for l in range(n_layers - 1, -1, -1):               # static unroll, L small
            h = jnp.dot(cur.astype(jnp.bfloat16), w1_ref[l],
                        preferred_element_type=jnp.float32)
            h = jnp.maximum(h + b1_ref[l], 0.0)              # Linear -> ReLU (f32)
            y = jnp.dot(h.astype(jnp.bfloat16), w2_ref[l],
                        preferred_element_type=jnp.float32)
            cur = y + b2_ref[l] + x_refs[l][...]             # Linear + residual (f32)
        out_ref[...] = cur.astype(out_ref.dtype)

    return kernel


def _pallas_cascade(xs, w1s, b1s, w2s, b2s, *, tr_target=1024):
    """xs: list of (rows, lane) f32 packed levels.  Returns (rows, lane) f32."""
    L = w1s.shape[0]
    n_lv = len(xs)
    rows, lane = xs[0].shape

    # Tile: big enough to amortize the ~0.35us per-step overhead, small enough
    # to keep >= ~8 grid steps so v7x's two TensorCores stay load-balanced.
    tr = min(tr_target, _round_up(pl.cdiv(rows, 8), 8))
    tr = max(8, min(tr, rows))
    grid = (pl.cdiv(rows, tr),)     # last block may be ragged -> masked stores

    cost = pl.CostEstimate(
        flops=4 * L * rows * lane * lane,                 # 2 MACs/flop * 2 matmuls
        transcendentals=0,
        bytes_accessed=4 * (n_lv + 1) * rows * lane       # read L+1 levels, write 1
                       + 2 * (2 * L * lane * lane)        # bf16 weight stacks
                       + 4 * (2 * L * lane),              # f32 bias stacks
    )

    act_spec = pl.BlockSpec((tr, lane), lambda i: (i, 0))
    out = pl.pallas_call(
        _make_cascade_kernel(L, n_lv),
        out_shape=jax.ShapeDtypeStruct((rows, lane), xs[0].dtype),
        grid_spec=pltpu.PrefetchScalarGridSpec(
            num_scalar_prefetch=0,
            grid=grid,
            in_specs=[
                pl.BlockSpec((L, lane, lane), lambda i: (0, 0, 0)),  # W1 stack
                pl.BlockSpec((L, 1, lane), lambda i: (0, 0, 0)),     # b1 stack
                pl.BlockSpec((L, lane, lane), lambda i: (0, 0, 0)),  # W2 stack
                pl.BlockSpec((L, 1, lane), lambda i: (0, 0, 0)),     # b2 stack
            ] + [act_spec] * n_lv,                                   # levels 0..L
            out_specs=pl.BlockSpec((tr, lane), lambda i: (i, 0)),
        ),
        compiler_params=pltpu.CompilerParams(
            dimension_semantics=("parallel",)),
        cost_estimate=cost,
    )(w1s, b1s, w2s, b2s, *xs)
    return out


def fusion_block_forward(x_list, params, *, tr_target=1024):
    """Pallas implementation of FusionBlock.forward.

    x_list: list of >= (n_tlayer + 1) arrays, each (B, N, window).
    params: list of n_tlayer tuples (w1, b1, w2, b2); weights in PyTorch
            (out, in) layout, biases of shape (window,).
    """
    n_tlayer = len(params)
    if n_tlayer == 0:
        return x_list[0]
    x_list = list(x_list)[: n_tlayer + 1]
    B, N, W = x_list[0].shape
    M = B * N

    # Pack P original rows per 128-wide vreg row when the feature dim allows it.
    P = 128 // W if (W <= 128 and 128 % W == 0) else 1
    lane = P * W
    align = 8 * P                                   # sublane + pack alignment only
    M_pad = _round_up(M, align)
    rows = M_pad // P

    def pack(x):                                    # (B,N,W) -> (rows, lane), free reshapes
        x2 = x.reshape(M, W)
        if M_pad != M:
            x2 = jnp.pad(x2, ((0, M_pad - M), (0, 0)))
        return x2.reshape(rows, lane)

    xs = [pack(x) for x in x_list]

    # Block-diagonal packed weights: y_group_g = x_group_g @ W^T  (bf16 on the MXU).
    eye = jnp.eye(P, dtype=jnp.float32)
    w1s = jnp.stack([jnp.kron(eye, p[0].T) for p in params]).astype(jnp.bfloat16)
    w2s = jnp.stack([jnp.kron(eye, p[2].T) for p in params]).astype(jnp.bfloat16)
    b1s = jnp.stack([jnp.tile(p[1], P)[None, :] for p in params])   # (L,1,lane) f32
    b2s = jnp.stack([jnp.tile(p[3], P)[None, :] for p in params])   # (L,1,lane) f32

    out = _pallas_cascade(xs, w1s, b1s, w2s, b2s, tr_target=tr_target)  # (rows, lane)
    out = out.reshape(M_pad, W)
    if M_pad != M:
        out = out[:M]
    return out.reshape(B, N, W)


def init_fusion_params(key, n_tlayer, window):
    """PyTorch nn.Linear-style init: U(-1/sqrt(in), 1/sqrt(in)); (out,in) weights."""
    params = []
    bound = 1.0 / (window ** 0.5)
    for _ in range(n_tlayer):
        key, k1, k2, k3, k4 = jax.random.split(key, 5)
        w1 = jax.random.uniform(k1, (window, window), jnp.float32, -bound, bound)
        b1 = jax.random.uniform(k2, (window,), jnp.float32, -bound, bound)
        w2 = jax.random.uniform(k3, (window, window), jnp.float32, -bound, bound)
        b2 = jax.random.uniform(k4, (window,), jnp.float32, -bound, bound)
        params.append((w1, b1, w2, b2))
    return params


def fusion_block_forward_ref(x_list, params):
    """Pure-JAX f32 reference (PyTorch semantics: y = x @ W.T + b)."""
    n_tlayer = len(params)
    x_list = list(x_list)
    for i in range(n_tlayer, 0, -1):
        w1, b1, w2, b2 = params[i - 1]
        x = x_list[i]
        h = jnp.maximum(x @ w1.T + b1, 0.0)
        y = h @ w2.T + b2
        x_list[i - 1] = y + x_list[i - 1]
    return x_list[0]


if __name__ == "__main__":
    # Shapes implied by the module: input_window (feature dim) = 32,
    # n_tlayer = 2 -> x_list has 3 tensors of shape (batch, nodes, window).
    batch, nodes, window, n_tlayer = 2, 16, 32, 2

    key = jax.random.PRNGKey(0)
    key, pkey = jax.random.split(key)
    params = init_fusion_params(pkey, n_tlayer, window)

    x_list = []
    for _ in range(n_tlayer + 1):
        key, xk = jax.random.split(key)
        x_list.append(jax.random.normal(xk, (batch, nodes, window), jnp.float32))

    out = fusion_block_forward(x_list, params)
    out = jax.block_until_ready(out)

    ref = fusion_block_forward_ref(x_list, params)
    assert out.shape == (batch, nodes, window)
    # bf16 MXU operands (f32 accumulation) -> loosened tolerance vs f32 reference.
    assert jnp.allclose(out, ref, atol=5e-2, rtol=5e-2), \
        float(jnp.max(jnp.abs(out - ref)))

    print("KERNEL_OK")
</pallas_src>

<mosaic_0001>
module attributes {stable_mosaic.version = 11 : i64} {
  func.func @kernel(%arg0: i32, %arg1: memref<2x128x128xbf16, #tpu.memory_space<vmem>>, %arg2: memref<2x1x128xf32, #tpu.memory_space<vmem>>, %arg3: memref<2x128x128xbf16, #tpu.memory_space<vmem>>, %arg4: memref<2x1x128xf32, #tpu.memory_space<vmem>>, %arg5: memref<8x128xf32, #tpu.memory_space<vmem>>, %arg6: memref<8x128xf32, #tpu.memory_space<vmem>>, %arg7: memref<8x128xf32, #tpu.memory_space<vmem>>, %arg8: memref<8x128xf32, #tpu.memory_space<vmem>>) attributes {dimension_semantics = [#tpu.dimension_semantics<parallel>], iteration_bounds = array<i64: 1>, scalar_prefetch = 0 : i64, scratch_operands = 0 : i64, tpu.core_type = #tpu.core_type<tc>, window_params = [{pipeline_mode = #tpu.pipeline_mode<synchronous>, transform_indices = @transform_0, window_bounds = array<i64: 2, 128, 128>}, {pipeline_mode = #tpu.pipeline_mode<synchronous>, transform_indices = @transform_1, window_bounds = array<i64: 2, 1, 128>}, {pipeline_mode = #tpu.pipeline_mode<synchronous>, transform_indices = @transform_2, window_bounds = array<i64: 2, 128, 128>}, {pipeline_mode = #tpu.pipeline_mode<synchronous>, transform_indices = @transform_3, window_bounds = array<i64: 2, 1, 128>}, {transform_indices = @transform_4, window_bounds = array<i64: 8, 128>}, {transform_indices = @transform_5, window_bounds = array<i64: 8, 128>}, {transform_indices = @transform_6, window_bounds = array<i64: 8, 128>}, {transform_indices = @transform_7, window_bounds = array<i64: 8, 128>}]} {
    %c0 = arith.constant 0 : index
    %c0_0 = arith.constant 0 : index
    %0 = vector.load %arg7[%c0, %c0_0] : memref<8x128xf32, #tpu.memory_space<vmem>>, vector<8x128xf32>
    %1 = arith.truncf %0 : vector<8x128xf32> to vector<8x128xbf16>
    %c1 = arith.constant 1 : index
    %c0_1 = arith.constant 0 : index
    %c0_2 = arith.constant 0 : index
    %2 = vector.load %arg1[%c1, %c0_1, %c0_2] : memref<2x128x128xbf16, #tpu.memory_space<vmem>>, vector<1x128x128xbf16>
    %3 = vector.shape_cast %2 : vector<1x128x128xbf16> to vector<128x128xbf16>
    %cst = arith.constant dense<0.000000e+00> : vector<8x128xf32>
    %4 = tpu.matmul %1, %3, %cst {dimension_numbers = #tpu.dot_dimension_numbers<[1], [0], [0], [1], [0, 0, 1, 1], [], []>} : vector<8x128xbf16>, vector<128x128xbf16>, vector<8x128xf32> -> vector<8x128xf32>
    %c1_3 = arith.constant 1 : index
    %c0_4 = arith.constant 0 : index
    %c0_5 = arith.constant 0 : index
    %5 = vector.load %arg2[%c1_3, %c0_4, %c0_5] : memref<2x1x128xf32, #tpu.memory_space<vmem>>, vector<1x1x128xf32>
    %6 = vector.shape_cast %5 : vector<1x1x128xf32> to vector<1x128xf32>
    %7 = vector.broadcast %6 : vector<1x128xf32> to vector<8x128xf32>
    %8 = arith.addf %4, %7 : vector<8x128xf32>
    %cst_6 = arith.constant 0.000000e+00 : f32
    %9 = vector.broadcast %cst_6 : f32 to vector<8x128xf32>
    %10 = arith.maximumf %8, %9 : vector<8x128xf32>
    %11 = arith.truncf %10 : vector<8x128xf32> to vector<8x128xbf16>
    %c1_7 = arith.constant 1 : index
    %c0_8 = arith.constant 0 : index
    %c0_9 = arith.constant 0 : index
    %12 = vector.load %arg3[%c1_7, %c0_8, %c0_9] : memref<2x128x128xbf16, #tpu.memory_space<vmem>>, vector<1x128x128xbf16>
    %13 = vector.shape_cast %12 : vector<1x128x128xbf16> to vector<128x128xbf16>
    %cst_10 = arith.constant dense<0.000000e+00> : vector<8x128xf32>
    %14 = tpu.matmul %11, %13, %cst_10 {dimension_numbers = #tpu.dot_dimension_numbers<[1], [0], [0], [1], [0, 0, 1, 1], [], []>} : vector<8x128xbf16>, vector<128x128xbf16>, vector<8x128xf32> -> vector<8x128xf32>
    %c1_11 = arith.constant 1 : index
    %c0_12 = arith.constant 0 : index
    %c0_13 = arith.constant 0 : index
    %15 = vector.load %arg4[%c1_11, %c0_12, %c0_13] : memref<2x1x128xf32, #tpu.memory_space<vmem>>, vector<1x1x128xf32>
    %16 = vector.shape_cast %15 : vector<1x1x128xf32> to vector<1x128xf32>
    %17 = vector.broadcast %16 : vector<1x128xf32> to vector<8x128xf32>
    %18 = arith.addf %14, %17 : vector<8x128xf32>
    %c0_14 = arith.constant 0 : index
    %c0_15 = arith.constant 0 : index
    %19 = vector.load %arg6[%c0_14, %c0_15] : memref<8x128xf32, #tpu.memory_space<vmem>>, vector<8x128xf32>
    %20 = arith.addf %18, %19 : vector<8x128xf32>
    %21 = arith.truncf %20 : vector<8x128xf32> to vector<8x128xbf16>
    %c0_16 = arith.constant 0 : index
    %c0_17 = arith.constant 0 : index
    %c0_18 = arith.constant 0 : index
    %22 = vector.load %arg1[%c0_16, %c0_17, %c0_18] : memref<2x128x128xbf16, #tpu.memory_space<vmem>>, vector<1x128x128xbf16>
    %23 = vector.shape_cast %22 : vector<1x128x128xbf16> to vector<128x128xbf16>
    %cst_19 = arith.constant dense<0.000000e+00> : vector<8x128xf32>
    %24 = tpu.matmul %21, %23, %cst_19 {dimension_numbers = #tpu.dot_dimension_numbers<[1], [0], [0], [1], [0, 0, 1, 1], [], []>} : vector<8x128xbf16>, vector<128x128xbf16>, vector<8x128xf32> -> vector<8x128xf32>
    %c0_20 = arith.constant 0 : index
    %c0_21 = arith.constant 0 : index
    %c0_22 = arith.constant 0 : index
    %25 = vector.load %arg2[%c0_20, %c0_21, %c0_22] : memref<2x1x128xf32, #tpu.memory_space<vmem>>, vector<1x1x128xf32>
    %26 = vector.shape_cast %25 : vector<1x1x128xf32> to vector<1x128xf32>
    %27 = vector.broadcast %26 : vector<1x128xf32> to vector<8x128xf32>
    %28 = arith.addf %24, %27 : vector<8x128xf32>
    %cst_23 = arith.constant 0.000000e+00 : f32
    %29 = vector.broadcast %cst_23 : f32 to vector<8x128xf32>
    %30 = arith.maximumf %28, %29 : vector<8x128xf32>
    %31 = arith.truncf %30 : vector<8x128xf32> to vector<8x128xbf16>
    %c0_24 = arith.constant 0 : index
    %c0_25 = arith.constant 0 : index
    %c0_26 = arith.constant 0 : index
    %32 = vector.load %arg3[%c0_24, %c0_25, %c0_26] : memref<2x128x128xbf16, #tpu.memory_space<vmem>>, vector<1x128x128xbf16>
    %33 = vector.shape_cast %32 : vector<1x128x128xbf16> to vector<128x128xbf16>
    %cst_27 = arith.constant dense<0.000000e+00> : vector<8x128xf32>
    %34 = tpu.matmul %31, %33, %cst_27 {dimension_numbers = #tpu.dot_dimension_numbers<[1], [0], [0], [1], [0, 0, 1, 1], [], []>} : vector<8x128xbf16>, vector<128x128xbf16>, vector<8x128xf32> -> vector<8x128xf32>
    %c0_28 = arith.constant 0 : index
    %c0_29 = arith.constant 0 : index
    %c0_30 = arith.constant 0 : index
    %35 = vector.load %arg4[%c0_28, %c0_29, %c0_30] : memref<2x1x128xf32, #tpu.memory_space<vmem>>, vector<1x1x128xf32>
    %36 = vector.shape_cast %35 : vector<1x1x128xf32> to vector<1x128xf32>
    %37 = vector.broadcast %36 : vector<1x128xf32> to vector<8x128xf32>
    %38 = arith.addf %34, %37 : vector<8x128xf32>
    %c0_31 = arith.constant 0 : index
    %c0_32 = arith.constant 0 : index
    %39 = vector.load %arg5[%c0_31, %c0_32] : memref<8x128xf32, #tpu.memory_space<vmem>>, vector<8x128xf32>
    %40 = arith.addf %38, %39 : vector<8x128xf32>
    %c0_33 = arith.constant 0 : index
    %c0_34 = arith.constant 0 : index
    %41 = vector.load %arg8[%c0_33, %c0_34] : memref<8x128xf32, #tpu.memory_space<vmem>>, vector<8x128xf32>
    tpu.vector_store %arg8[%c0_33, %c0_34], %40 {strides = array<i32>} : memref<8x128xf32, #tpu.memory_space<vmem>>, vector<8x128xf32>,
    return
  }
  func.func @transform_0(%arg0: i32) -> (i32, i32, i32) {
    %c0_i32 = arith.constant 0 : i32
    %c0_i32_0 = arith.constant 0 : i32
    %c0_i32_1 = arith.constant 0 : i32
    %c0_i32_2 = arith.constant 0 : i32
    return %c0_i32, %c0_i32_0, %c0_i32_1 : i32, i32, i32
  }
  func.func @transform_1(%arg0: i32) -> (i32, i32, i32) {
    %c0_i32 = arith.constant 0 : i32
    %c0_i32_0 = arith.constant 0 : i32
    %c0_i32_1 = arith.constant 0 : i32
    %c0_i32_2 = arith.constant 0 : i32
    return %c0_i32, %c0_i32_0, %c0_i32_1 : i32, i32, i32
  }
  func.func @transform_2(%arg0: i32) -> (i32, i32, i32) {
    %c0_i32 = arith.constant 0 : i32
    %c0_i32_0 = arith.constant 0 : i32
    %c0_i32_1 = arith.constant 0 : i32
    %c0_i32_2 = arith.constant 0 : i32
    return %c0_i32, %c0_i32_0, %c0_i32_1 : i32, i32, i32
  }
  func.func @transform_3(%arg0: i32) -> (i32, i32, i32) {
    %c0_i32 = arith.constant 0 : i32
    %c0_i32_0 = arith.constant 0 : i32
    %c0_i32_1 = arith.constant 0 : i32
    %c0_i32_2 = arith.constant 0 : i32
    return %c0_i32, %c0_i32_0, %c0_i32_1 : i32, i32, i32
  }
  func.func @transform_4(%arg0: i32) -> (i32, i32) {
    %c0_i32 = arith.constant 0 : i32
    %c0_i32_0 = arith.constant 0 : i32
    return %arg0, %c0_i32 : i32, i32
  }
  func.func @transform_5(%arg0: i32) -> (i32, i32) {
    %c0_i32 = arith.constant 0 : i32
    %c0_i32_0 = arith.constant 0 : i32
    return %arg0, %c0_i32 : i32, i32
  }
  func.func @transform_6(%arg0: i32) -> (i32, i32) {
    %c0_i32 = arith.constant 0 : i32
    %c0_i32_0 = arith.constant 0 : i32
    return %arg0, %c0_i32 : i32, i32
  }
  func.func @transform_7(%arg0: i32) -> (i32, i32) {
    %c0_i32 = arith.constant 0 : i32
    %c0_i32_0 = arith.constant 0 : i32
    return %arg0, %c0_i32 : i32, i32
  }
}

</mosaic_0001>

<bundles_post_ra>
// kernel: tpu_custom_call.1
= control target key start
LH: loop header
LB: loop body
LE: loop exit
PB: predicated region body
PF: predicated region fallthrough
CT: control target
= control target key end

     0   :  { %12 = vsyncpa [#allocation3], 0  ;;  %s1042_s0 = inlined_call_operand.hbm [shape: bf16[2,128,128], index: 0, kind: input, shape index: {}]   ;;  %s1043_s1 = inlined_call_operand.vmem [shape: f32[2,1,128], index: 1, kind: input, shape index: {}]   ;;  %s1044_s2 = inlined_call_operand.hbm [shape: bf16[2,128,128], index: 2, kind: input, shape index: {}]   ;;  %s1045_s3 = inlined_call_operand.hbm [shape: f32[2,1,128], index: 3, kind: input, shape index: {}]   ;;  %s1046_s4 = inlined_call_operand.vmem [shape: f32[8,128], index: 4, kind: input, shape index: {}]   ;;  %s1047_s5 = inlined_call_operand.vmem [shape: f32[8,128], index: 5, kind: input, shape index: {}]   ;;  %s1048_s6 = inlined_call_operand.hbm [shape: f32[8,128], index: 6, kind: input, shape index: {}]   ;;  %s1049_s7 = inlined_call_operand.hbm [shape: f32[8,128], index: 7, kind: output, shape index: {}]  }
   0x1   :  { %13 = vsyncpa [#allocation6], 0 }
   0x2   :  { %14 = vsyncpa [#allocation9], 0 }
   0x3   :  { %15 = vsyncpa [#allocation4], 0  ;;  %s872_s24 = smov [#allocation5]   ;;  %s873_s26 = smov [#allocation2]  }
   0x4   :  { %s35_s25 = sshll.u32 %s872_s24, 4  ;;  %s21_s27 = sshll.u32 %s873_s26, 4  ;;  %s36_s25 = int_to_ptr.vmem [resolvable:$true] %s35_s25  ;;  %s923_s27 = int_to_ptr.vmem [resolvable:$true] %s21_s27 }
   0x5   :  { %s754_s30 = scalar_lea.hbm %s1044_s2, 2048 }
   0x6   :  { %p755_p0 = scmp.ne.s32.totalorder %s1044_s2, %s754_s30  ;;  %p758_p1 = scmp.lt.u32.totalorder %s754_s30, %s1044_s2 }
   0x8   :  { %p760_p2 = pnand %p758_p1, %p755_p0 }
   0xa   :  { %763 = shalt.err (!%p760_p2)
}
   0xb   :  { %s764_s12 = scalar_lea.vmem %s36_s25, 2048  ;;  %p769_p4 = scmp.lt.s32.totalorder %s36_s25, %s36_s25 }
   0xc   :  { %p765_p3 = scmp.ne.s32.totalorder %s36_s25, %s764_s12  ;;  %p770_p5 = scmp.lt.s32.totalorder %s764_s12, %s764_s12 }
   0xe   :  { %p771_p6 = por %p770_p5, %p769_p4 }
  0x10   :  { %p772_p7 = pnand %p771_p6, %p765_p3 }
  0x12   :  { %775 = shalt.err (!%p772_p7)
}
  0x13   :  { %s874_s13 = smov 64   ;;  %s875_s14 = smov 4  }
  0x14   :  { %41 = dma.hbm_to_vmem [thread:$0]  %s1044_s2, 2048, %s36_s25, [#allocation6], %s874_s13, %s874_s13, %s875_s14  }
  0x15   :  { %s776_s19 = scalar_lea.hbm %s1042_s0, 2048 }
  0x16   :  { %p777_p8 = scmp.ne.s32.totalorder %s1042_s0, %s776_s19  ;;  %p780_p9 = scmp.lt.u32.totalorder %s776_s19, %s1042_s0 }
  0x18   :  { %p782_p10 = pnand %p780_p9, %p777_p8 }
  0x1a   :  { %785 = shalt.err (!%p782_p10)
}
  0x1b   :  { %s786_s24 = scalar_lea.vmem %s923_s27, 2048  ;;  %p791_p12 = scmp.lt.s32.totalorder %s923_s27, %s923_s27 }
  0x1c   :  { %p787_p11 = scmp.ne.s32.totalorder %s923_s27, %s786_s24  ;;  %p792_p13 = scmp.lt.s32.totalorder %s786_s24, %s786_s24 }
  0x1e   :  { %p793_p0 = por %p792_p13, %p791_p12 }
  0x20   :  { %p794_p1 = pnand %p793_p0, %p787_p11 }
  0x22   :  { %797 = shalt.err (!%p794_p1)
}
  0x23   :  { %27 = dma.hbm_to_vmem [thread:$0]  %s1042_s0, 2048, %s923_s27, [#allocation3], %s874_s13, %s874_s13, %s875_s14  }
  0x24   :  { %s876_s26 = smov [#allocation7]   ;;  %s798_s8 = scalar_lea.hbm %s1045_s3, 32 }
  0x25   :  { %s47_s28 = sshll.u32 %s876_s26, 4  ;;  %p799_p2 = scmp.ne.s32.totalorder %s1045_s3, %s798_s8  ;;  %s48_s28 = int_to_ptr.vmem [resolvable:$true] %s47_s28 }
  0x26   :  { %p802_p3 = scmp.lt.u32.totalorder %s798_s8, %s1045_s3 }
  0x28   :  { %p804_p4 = pnand %p802_p3, %p799_p2 }
  0x2a   :  { %807 = shalt.err (!%p804_p4)
}
  0x2b   :  { %s808_s15 = scalar_lea.vmem %s48_s28, 32  ;;  %p813_p6 = scmp.lt.s32.totalorder %s48_s28, %s48_s28 }
  0x2c   :  { %p809_p5 = scmp.ne.s32.totalorder %s48_s28, %s808_s15  ;;  %p814_p7 = scmp.lt.s32.totalorder %s808_s15, %s808_s15 }
  0x2e   :  { %p815_p8 = por %p814_p7, %p813_p6 }
  0x30   :  { %p816_p9 = pnand %p815_p8, %p809_p5 }
  0x32   :  { %819 = shalt.err (!%p816_p9)
}
  0x33   :  { %s877_s0 = smov 16   ;;  %s878_s27 = smov 1  }
  0x34   :  { %53 = dma.hbm_to_vmem [thread:$0]  %s1045_s3, 32, %s48_s28, [#allocation6], %s877_s0, %s877_s0, %s878_s27  }
  0x35   :  { %s879_s16 = smov [#allocation8]   ;;  %s820_s20 = scalar_lea.hbm %s1048_s6, 128 }
  0x36   :  { %s64_s17 = sshll.u32 %s879_s16, 4  ;;  %p821_p10 = scmp.ne.s32.totalorder %s1048_s6, %s820_s20  ;;  %s65_s17 = int_to_ptr.vmem [resolvable:$true] %s64_s17 }
  0x37   :  { %p824_p11 = scmp.lt.u32.totalorder %s820_s20, %s1048_s6 }
  0x39   :  { %p826_p12 = pnand %p824_p11, %p821_p10 }
  0x3b   :  { %829 = shalt.err (!%p826_p12)
}
  0x3c   :  { %s830_s2 = scalar_lea.vmem %s65_s17, 128  ;;  %p835_p0 = scmp.lt.s32.totalorder %s65_s17, %s65_s17 }
  0x3d   :  { %p831_p13 = scmp.ne.s32.totalorder %s65_s17, %s830_s2  ;;  %p836_p1 = scmp.lt.s32.totalorder %s830_s2, %s830_s2 }
  0x3f   :  { %p837_p2 = por %p836_p1, %p835_p0 }
  0x41   :  { %p838_p3 = pnand %p837_p2, %p831_p13 }
  0x43   :  { %841 = shalt.err (!%p838_p3)
}
  0x44   :  { %67 = dma.hbm_to_vmem [thread:$0]  %s1048_s6, 128, %s65_s17, [#allocation9]  }
  0x45   :  { %864 = dma.done.wait [#allocation3], 2048  }
  0x46   :  { %865 = vsyncadd [#allocation3], 4294965248 }
  0x47   :  { %866 = dma.done.wait [#allocation6], 2080  }
  0x48   :  { %867 = vsyncadd [#allocation6], 4294965216 }
  0x49   :  { %868 = dma.done.wait [#allocation9], 128  }
  0x4a   :  { %869 = vsyncadd [#allocation9], 4294967168  ;;  %v880_v0 = vmov 0.0   ;;  %vm881_vm0 = vmmov 0   ;;  %v722_v1 = vld [vmem:[#allocation2 + $0x40] sm:$0xff]   ;;  %v723_v2 = vld [vmem:[#allocation2 + $0x48] sm:$0xff]  }
  0x4b   :  { %631 = vmatprep.subr.bf16.mxu0 %v880_v0  ;;  %647 = vmatprep.mubr.msk.bf16.mxu0 %vm881_vm0, %v880_v0  ;;  %v724_v3 = vld [vmem:[#allocation2 + $0x50] sm:$0xff]   ;;  %v730_v4 = vld [vmem:[#allocation5 + $0x40] sm:$0xff]   ;;  %v725_v5 = vld [vmem:[#allocation2 + $0x58] sm:$0xff]   ;;  %s882_s10 = smov [#allocation10]  }
  0x4c   :  { %651 = vmatprep.subr.bf16.mxu1 %v880_v0  ;;  %667 = vmatprep.mubr.msk.bf16.mxu1 %vm881_vm0, %v880_v0  ;;  %v731_v6 = vld [vmem:[#allocation5 + $0x48] sm:$0xff]   ;;  %v726_v7 = vld [vmem:[#allocation2 + $0x60] sm:$0xff]   ;;  %v732_v8 = vld [vmem:[#allocation5 + $0x50] sm:$0xff]   ;;  %s547_s11 = sshll.u32 %s882_s10, 4  ;;  %s548_s11 = int_to_ptr.vmem [resolvable:$true] %s547_s11 }
  0x4d   :  { %632 = vmatpush3.bf16.msra.mxu0 %v722_v1  ;;  %652 = vmatpush3.bf16.msra.mxu1 %v730_v4  ;;  %v727_v9 = vld [vmem:[#allocation2 + $0x68] sm:$0xff]   ;;  %v733_v10 = vld [vmem:[#allocation5 + $0x58] sm:$0xff]   ;;  %v728_v11 = vld [vmem:[#allocation2 + $0x70] sm:$0xff]   ;;  %p847_p5 = scmp.lt.s32.totalorder %s548_s11, %s548_s11 }
  0x4e   :  { %633 = vmatprep.subr.bf16.mxu0 %v880_v0  ;;  %653 = vmatprep.subr.bf16.mxu1 %v880_v0  ;;  %v734_v12 = vld [vmem:[#allocation5 + $0x60] sm:$0xff]   ;;  %v729_v13 = vld [vmem:[#allocation2 + $0x78] sm:$0xff]   ;;  %v735_v15 = vld [vmem:[#allocation5 + $0x68] sm:$0xff]  }
  0x4f   :  { %v81_v14 = vld [vmem:[#allocation8] sm:$0xff]  ;;  %v736_v17 = vld [vmem:[#allocation5 + $0x70] sm:$0xff]   ;;  %v737_v18 = vld [vmem:[#allocation5 + $0x78] sm:$0xff]  }
  0x50   :  { %v82_v16 = vpack.c.bf16 %v81_v14, %v81_v14  ;;  %v738_v19 = vld [vmem:[#allocation2] sm:$0xff]   ;;  %v739_v20 = vld [vmem:[#allocation2 + $0x8] sm:$0xff]   ;;  %v740_v21 = vld [vmem:[#allocation2 + $0x10] sm:$0xff]  }
  0x51   :  { %634 = vmatpush3.bf16.msra.mxu0 %v723_v2  ;;  %654 = vmatpush3.bf16.msra.mxu1 %v731_v6  ;;  %v741_v22 = vld [vmem:[#allocation2 + $0x18] sm:$0xff]   ;;  %v742_v23 = vld [vmem:[#allocation2 + $0x20] sm:$0xff]   ;;  %v743_v24 = vld [vmem:[#allocation2 + $0x28] sm:$0xff]  }
  0x52   :  { %635 = vmatprep.subr.bf16.mxu0 %v880_v0  ;;  %655 = vmatprep.subr.bf16.mxu1 %v880_v0  ;;  %v559_v25 = vld [vmem:[%s1043_s1 + $0x1] ss:$0 sm:$0xff]  ;;  %v744_v33 = vld [vmem:[#allocation2 + $0x30] sm:$0xff]   ;;  %v745_v34 = vld [vmem:[#allocation2 + $0x38] sm:$0xff]  }
  0x53   :  { %v746_v35 = vld [vmem:[#allocation5] sm:$0xff]   ;;  %v747_v36 = vld [vmem:[#allocation5 + $0x8] sm:$0xff]   ;;  %v748_v37 = vld [vmem:[#allocation5 + $0x10] sm:$0xff]  }
  0x54   :  { %v749_v38 = vld [vmem:[#allocation5 + $0x18] sm:$0xff]   ;;  %v750_v39 = vld [vmem:[#allocation5 + $0x20] sm:$0xff]   ;;  %v751_v40 = vld [vmem:[#allocation5 + $0x28] sm:$0xff]  }
  0x55   :  { %636 = vmatpush3.bf16.msra.mxu0 %v724_v3  ;;  %656 = vmatpush3.bf16.msra.mxu1 %v732_v8  ;;  %v568_v41 = vld [vmem:[#allocation7 + $0x1] ss:$0 sm:$0xff]  ;;  %v752_v50 = vld [vmem:[#allocation5 + $0x30] sm:$0xff]   ;;  %v753_v51 = vld [vmem:[#allocation5 + $0x38] sm:$0xff]  }
  0x56   :  { %637 = vmatprep.subr.bf16.mxu0 %v880_v0  ;;  %657 = vmatprep.subr.bf16.mxu1 %v880_v0  ;;  %v311_v43 = vld [vmem:[%s1047_s5] sm:$0xff] }
  0x57   :  { %v577_v52 = vld [vmem:[%s1043_s1] ss:$0 sm:$0xff]  ;;  %s842_s1 = scalar_lea.vmem %s548_s11, 128 }
  0x58   :  { %v586_v60 = vld [vmem:[#allocation7] ss:$0 sm:$0xff]  ;;  %p843_p4 = scmp.ne.s32.totalorder %s548_s11, %s842_s1  ;;  %p848_p6 = scmp.lt.s32.totalorder %s842_s1, %s842_s1 }
  0x59   :  { %638 = vmatpush3.bf16.msra.mxu0 %v725_v5  ;;  %658 = vmatpush3.bf16.msra.mxu1 %v733_v10  ;;  %v538_v62 = vld [vmem:[%s1046_s4] sm:$0xff] }
  0x5a   :  { %639 = vmatprep.subr.bf16.mxu0 %v880_v0  ;;  %659 = vmatprep.subr.bf16.mxu1 %v880_v0  ;;  %p849_p7 = por %p848_p6, %p847_p5 }
  0x5c   :  { %p850_p8 = pnand %p849_p7, %p843_p4 }
  0x5d   :  { %640 = vmatpush3.bf16.msra.mxu0 %v726_v7  ;;  %660 = vmatpush3.bf16.msra.mxu1 %v734_v12 }
  0x5e   :  { %641 = vmatprep.subr.bf16.mxu0 %v880_v0  ;;  %661 = vmatprep.subr.bf16.mxu1 %v880_v0 }
  0x61   :  { %642 = vmatpush3.bf16.msra.mxu0 %v727_v9  ;;  %662 = vmatpush3.bf16.msra.mxu1 %v735_v15 }
  0x62   :  { %643 = vmatprep.subr.bf16.mxu0 %v880_v0  ;;  %663 = vmatprep.subr.bf16.mxu1 %v880_v0 }
  0x65   :  { %644 = vmatpush3.bf16.msra.mxu0 %v728_v11  ;;  %664 = vmatpush3.bf16.msra.mxu1 %v736_v17 }
  0x66   :  { %645 = vmatprep.subr.bf16.mxu0 %v880_v0  ;;  %665 = vmatprep.subr.bf16.mxu1 %v880_v0 }
  0x69   :  { %646 = vmatpush3.bf16.msra.mxu0 %v729_v13  ;;  %666 = vmatpush3.bf16.msra.mxu1 %v737_v18 }
  0x6a   :  { %671 = vmatprep.subr.bf16.mxu0 %v880_v0  ;;  %691 = vmatprep.subr.bf16.mxu1 %v880_v0 }
  0x6c   :  { %648 = vmatmul.mubr.bf16.vlgmr.msra.gmra.mrb[0].mxu0 %v82_v16 }
  0x6d   :  { %687 = vmatprep.mubr.msk.bf16.mxu0 %vm881_vm0, %v880_v0  ;;  %672 = vmatpush3.bf16.msra.mxu0 %v738_v19 }
  0x6e   :  { %673 = vmatprep.subr.bf16.mxu0 %v880_v0 }
  0x71   :  { %674 = vmatpush3.bf16.msra.mxu0 %v739_v20 }
  0x72   :  { %675 = vmatprep.subr.bf16.mxu0 %v880_v0 }
  0x75   :  { %676 = vmatpush3.bf16.msra.mxu0 %v740_v21 }
  0x76   :  { %677 = vmatprep.subr.bf16.mxu0 %v880_v0 }
  0x79   :  { %678 = vmatpush3.bf16.msra.mxu0 %v741_v22 }
  0x7a   :  { %679 = vmatprep.subr.bf16.mxu0 %v880_v0 }
  0x7d   :  { %680 = vmatpush3.bf16.msra.mxu0 %v742_v23 }
  0x7e   :  { %681 = vmatprep.subr.bf16.mxu0 %v880_v0 }
  0x81   :  { %682 = vmatpush3.bf16.msra.mxu0 %v743_v24 }
  0x82   :  { %683 = vmatprep.subr.bf16.mxu0 %v880_v0 }
  0x85   :  { %684 = vmatpush3.bf16.msra.mxu0 %v744_v33 }
  0x86   :  { %685 = vmatprep.subr.bf16.mxu0 %v880_v0 }
  0x89   :  { %686 = vmatpush3.bf16.msra.mxu0 %v745_v34 }
 0x13f   :  { %v190_v26 = vpop.f32.mrb[0].mxu0 }
 0x140   :  { %v191_v27 = vadd.f32 %v559_v25, %v190_v26  ;;  %v649_v28 = vpop.f32.mrb[1].mxu0 }
 0x141   :  { %v193_v29 = vpop.f32.mrb[2].mxu0 }
 0x142   :  { %v196_v30 = vmax.f32 %v191_v27, 0.0  ;;  %v650_v31 = vpop.f32.mrb[3].mxu0 }
 0x144   :  { %v197_v32 = vpack.c.bf16 %v196_v30, %v196_v30 }
 0x146   :  { %668 = vmatmul.mubr.bf16.vlgmr.msra.gmra.mrb[0].mxu1 %v197_v32 }
 0x147   :  { %707 = vmatprep.mubr.msk.bf16.mxu1 %vm881_vm0, %v880_v0  ;;  %692 = vmatpush3.bf16.msra.mxu1 %v746_v35 }
 0x148   :  { %693 = vmatprep.subr.bf16.mxu1 %v880_v0 }
 0x14b   :  { %694 = vmatpush3.bf16.msra.mxu1 %v747_v36 }
 0x14c   :  { %695 = vmatprep.subr.bf16.mxu1 %v880_v0 }
 0x14f   :  { %696 = vmatpush3.bf16.msra.mxu1 %v748_v37 }
 0x150   :  { %697 = vmatprep.subr.bf16.mxu1 %v880_v0 }
 0x153   :  { %698 = vmatpush3.bf16.msra.mxu1 %v749_v38 }
 0x154   :  { %699 = vmatprep.subr.bf16.mxu1 %v880_v0 }
 0x157   :  { %700 = vmatpush3.bf16.msra.mxu1 %v750_v39 }
 0x158   :  { %701 = vmatprep.subr.bf16.mxu1 %v880_v0 }
 0x15b   :  { %702 = vmatpush3.bf16.msra.mxu1 %v751_v40 }
 0x15c   :  { %703 = vmatprep.subr.bf16.mxu1 %v880_v0 }
 0x15f   :  { %704 = vmatpush3.bf16.msra.mxu1 %v752_v50 }
 0x160   :  { %705 = vmatprep.subr.bf16.mxu1 %v880_v0 }
 0x163   :  { %706 = vmatpush3.bf16.msra.mxu1 %v753_v51 }
 0x219   :  { %v305_v42 = vpop.f32.mrb[0].mxu1 }
 0x21a   :  { %v306_v44 = vadd.f32 %v568_v41, %v305_v42  ;;  %v669_v45 = vpop.f32.mrb[1].mxu1 }
 0x21b   :  { %v308_v46 = vpop.f32.mrb[2].mxu1 }
 0x21c   :  { %v312_v47 = vadd.f32 %v311_v43, %v306_v44  ;;  %v670_v48 = vpop.f32.mrb[3].mxu1 }
 0x21e   :  { %v313_v49 = vpack.c.bf16 %v312_v47, %v312_v47 }
 0x220   :  { %688 = vmatmul.mubr.bf16.vlgmr.msra.gmra.mrb[4].mxu0 %v313_v49 }
 0x2f3   :  { %v419_v53 = vpop.f32.mrb[4].mxu0 }
 0x2f4   :  { %v420_v54 = vadd.f32 %v577_v52, %v419_v53  ;;  %v689_v55 = vpop.f32.mrb[5].mxu0 }
 0x2f5   :  { %v422_v56 = vpop.f32.mrb[6].mxu0 }
 0x2f6   :  { %v425_v57 = vmax.f32 %v420_v54, 0.0  ;;  %v690_v58 = vpop.f32.mrb[7].mxu0 }
 0x2f8   :  { %v426_v59 = vpack.c.bf16 %v425_v57, %v425_v57 }
 0x2fa   :  { %708 = vmatmul.mubr.bf16.vlgmr.msra.gmra.mrb[4].mxu1 %v426_v59 }
 0x3cd   :  { %v532_v61 = vpop.f32.mrb[4].mxu1 }
 0x3ce   :  { %v533_v63 = vadd.f32 %v586_v60, %v532_v61  ;;  %v709_v0 = vpop.f32.mrb[5].mxu1 }
 0x3cf   :  { %v535_v1 = vpop.f32.mrb[6].mxu1 }
 0x3d0   :  { %v539_v2 = vadd.f32 %v538_v62, %v533_v63  ;;  %v710_v3 = vpop.f32.mrb[7].mxu1 }
 0x3d2   :  { %540 = vst [vmem:[#allocation10] sm:$0xff] %v539_v2 }
 0x3d3   :  { %853 = shalt.err (!%p850_p8)
}
 0x3d4   :  { %s854_s4 = scalar_lea.hbm %s1049_s7, 128 }
 0x3d5   :  { %p855_p9 = scmp.ne.s32.totalorder %s1049_s7, %s854_s4  ;;  %p858_p10 = scmp.lt.u32.totalorder %s854_s4, %s1049_s7 }
 0x3d7   :  { %p860_p11 = pnand %p858_p10, %p855_p9 }
 0x3d9   :  { %863 = shalt.err (!%p860_p11)
}
 0x3da   :  { %550 = dma.vmem_to_hbm [thread:$0]  %s548_s11, 128, %s1049_s7, [#allocation4]  }
 0x3db   :  { %870 = dma.done.wait [#allocation4], 128  }
 0x3dc   :  { %871 = vsyncadd [#allocation4], 4294967168 }
 0x3dd   :  { %554 = vsyncpa [#allocation3], 1 }
 0x3de   :  { %555 = vsyncpa [#allocation6], 1 }
 0x3df   :  { %556 = vsyncpa [#allocation9], 1 }
 0x3e0   :  { %557 = vsyncpa [#allocation4], 1 }

</bundles_post_ra>
